<compile_context>
chip_gen: v7x
topology: tpu7x:2x2x1
jax: 0.10.0
libtpu: 0.0.40
codegen_flags: <defaults>
</compile_context>

<pallas_src>
import functools
import math

import jax
import jax.numpy as jnp
from jax import lax
from jax.experimental import pallas as pl
from jax.experimental.pallas import tpu as pltpu

_LANE = 128                      # lane-dense GEMM output columns
_TM_TARGET = 256                 # max rows per grid step
_VMEM_LIMIT = 48 * 1024 * 1024   # explicit scoped-VMEM budget (safe on v5e/v6e/v7x)


def _round_up(x, m):
    return (x + m - 1) // m * m


def _pad2(a, rows, cols):
    r, c = a.shape
    return jnp.pad(a, ((0, rows - r), (0, cols - c)))


def _m_tiling(m):
    # Row tile: multiple of 16 (bf16 sublane packing), capped at _TM_TARGET,
    # and chosen so the grid has >= 2 steps whenever M allows (feeds both
    # TensorCores on v7x and gives the pipeliner something to overlap).
    mp = _round_up(m, 16)
    tm = min(_TM_TARGET, max(16, _round_up((mp + 1) // 2, 16)))
    mp = _round_up(mp, tm)
    return tm, mp


_CPARAMS = pltpu.CompilerParams(dimension_semantics=("parallel",),
                                vmem_limit_bytes=_VMEM_LIMIT)


# ----------------------------------------------------------------------------
# Pallas kernels
# ----------------------------------------------------------------------------
def _ln_kernel(x_ref, g_ref, b_ref, o_ref, *, eps):
    # Row-wise LayerNorm with fused affine; f32 math, output dtype of o_ref.
    x = x_ref[...]
    mu = jnp.mean(x, axis=-1, keepdims=True)
    xc = x - mu
    var = jnp.mean(xc * xc, axis=-1, keepdims=True)
    o_ref[...] = ((xc * lax.rsqrt(var + eps)) * g_ref[...] + b_ref[...]).astype(o_ref.dtype)


def _gemm_kernel(x_ref, w_ref, o_ref, *, relu):
    # bf16 x bf16 -> f32 accumulate on the MXU (no bias: qkv path).
    acc = jnp.dot(x_ref[...], w_ref[...], preferred_element_type=jnp.float32)
    if relu:
        acc = jnp.maximum(acc, 0.0)
    o_ref[...] = acc.astype(o_ref.dtype)


def _gemm_bias_kernel(x_ref, w_ref, b_ref, o_ref, *, relu):
    # bf16 x bf16 -> f32 accumulate, fused bias (+ReLU) epilogue.
    acc = jnp.dot(x_ref[...], w_ref[...], preferred_element_type=jnp.float32) + b_ref[...]
    if relu:
        acc = jnp.maximum(acc, 0.0)
    o_ref[...] = acc.astype(o_ref.dtype)


def _ffn_fused_kernel(x_ref, g_ref, be_ref, w1_ref, b1_ref, w2_ref, b2_ref, o_ref, *, eps):
    # Whole FFN branch in one kernel:
    #   out = x + ( relu(LN(x) @ W1 + b1) @ W2 + b2 )
    # The (tm, mlp_pad) hidden stays on-chip (vregs / compiler-managed VMEM).
    x = x_ref[...]                                          # (tm, D) f32, also residual
    mu = jnp.mean(x, axis=-1, keepdims=True)
    xc = x - mu
    var = jnp.mean(xc * xc, axis=-1, keepdims=True)
    y = (xc * lax.rsqrt(var + eps)) * g_ref[...] + be_ref[...]
    h = jnp.dot(y.astype(jnp.bfloat16), w1_ref[...], preferred_element_type=jnp.float32)
    h = jnp.maximum(h + b1_ref[...], 0.0)                   # (tm, mlp_pad)
    out = jnp.dot(h.astype(jnp.bfloat16), w2_ref[...], preferred_element_type=jnp.float32)
    o_ref[...] = x + out + b2_ref[...]


# ----------------------------------------------------------------------------
# Pallas wrappers (K unpadded; M padded with cdiv-style row tiles)
# ----------------------------------------------------------------------------
def pallas_layernorm(x2d, gamma, beta, *, eps=1e-5, out_dtype=jnp.bfloat16):
    # gamma/beta are pre-packed (1, D) f32.
    m, d = x2d.shape
    tm, mp = _m_tiling(m)
    xp = x2d if mp == m else jnp.pad(x2d, ((0, mp - m), (0, 0)))
    out = pl.pallas_call(
        functools.partial(_ln_kernel, eps=eps),
        out_shape=jax.ShapeDtypeStruct((mp, d), out_dtype),
        grid_spec=pltpu.PrefetchScalarGridSpec(
            num_scalar_prefetch=0,
            grid=(mp // tm,),
            in_specs=[pl.BlockSpec((tm, d), lambda i: (i, 0)),
                      pl.BlockSpec((1, d), lambda i: (0, 0)),
                      pl.BlockSpec((1, d), lambda i: (0, 0))],
            out_specs=pl.BlockSpec((tm, d), lambda i: (i, 0)),
        ),
        compiler_params=_CPARAMS,
    )(xp, gamma, beta)
    return out[:m]


def pallas_linear(x2d, w_packed, b_packed, *, n_out, relu=False, out_dtype=jnp.float32):
    # x2d: (M, K); w_packed: (K, Npad) bf16 pre-packed; b_packed: (1, Npad) f32 or None.
    m, k = x2d.shape
    kw, np_ = w_packed.shape
    assert kw == k
    tm, mp = _m_tiling(m)
    xp = x2d.astype(jnp.bfloat16)
    if mp != m:
        xp = jnp.pad(xp, ((0, mp - m), (0, 0)))

    in_specs = [pl.BlockSpec((tm, k), lambda i: (i, 0)),
                pl.BlockSpec((k, np_), lambda i: (0, 0))]
    args = [xp, w_packed]
    if b_packed is None:
        kernel = functools.partial(_gemm_kernel, relu=relu)
    else:
        kernel = functools.partial(_gemm_bias_kernel, relu=relu)
        in_specs.append(pl.BlockSpec((1, np_), lambda i: (0, 0)))
        args.append(b_packed)

    out = pl.pallas_call(
        kernel,
        out_shape=jax.ShapeDtypeStruct((mp, np_), out_dtype),
        grid_spec=pltpu.PrefetchScalarGridSpec(
            num_scalar_prefetch=0,
            grid=(mp // tm,),
            in_specs=in_specs,
            out_specs=pl.BlockSpec((tm, np_), lambda i: (i, 0)),
        ),
        compiler_params=_CPARAMS,
    )(*args)
    return out[:m, :n_out]


def pallas_ffn_block(x2d, layer, *, eps=1e-5):
    # x + FeedForward(LayerNorm(x)) fused in one pallas_call. Returns f32 (M, D).
    m, d = x2d.shape
    tm, mp = _m_tiling(m)
    xp = x2d if mp == m else jnp.pad(x2d, ((0, mp - m), (0, 0)))
    mlp_pad = layer["ffn_w1"].shape[1]
    out = pl.pallas_call(
        functools.partial(_ffn_fused_kernel, eps=eps),
        out_shape=jax.ShapeDtypeStruct((mp, d), jnp.float32),
        grid_spec=pltpu.PrefetchScalarGridSpec(
            num_scalar_prefetch=0,
            grid=(mp // tm,),
            in_specs=[pl.BlockSpec((tm, d), lambda i: (i, 0)),        # x (LN input + residual)
                      pl.BlockSpec((1, d), lambda i: (0, 0)),         # ln2 gamma
                      pl.BlockSpec((1, d), lambda i: (0, 0)),         # ln2 beta
                      pl.BlockSpec((d, mlp_pad), lambda i: (0, 0)),   # W1 (in, out) bf16
                      pl.BlockSpec((1, mlp_pad), lambda i: (0, 0)),   # b1
                      pl.BlockSpec((mlp_pad, d), lambda i: (0, 0)),   # W2 (in, out) bf16
                      pl.BlockSpec((1, d), lambda i: (0, 0))],        # b2
            out_specs=pl.BlockSpec((tm, d), lambda i: (i, 0)),
        ),
        compiler_params=_CPARAMS,
    )(xp, layer["ln2_g"], layer["ln2_b"], layer["ffn_w1"], layer["ffn_b1"],
      layer["ffn_w2"], layer["ffn_b2"])
    return out[:m]


# ----------------------------------------------------------------------------
# Weight pre-packing (done once, outside the jitted forward)
# ----------------------------------------------------------------------------
def pack_params(params):
    packed = []
    for L in params["layers"]:
        d = L["ln1_g"].shape[0]
        mlp = L["ffn_b1"].shape[0]
        mlp_pad = _round_up(mlp, _LANE)
        dp = _round_up(d, _LANE)
        packed.append({
            "ln1_g": L["ln1_g"].reshape(1, d).astype(jnp.float32),
            "ln1_b": L["ln1_b"].reshape(1, d).astype(jnp.float32),
            "qkv_w": _pad2(L["qkv_w"].T, d, _round_up(3 * d, _LANE)).astype(jnp.bfloat16),
            "proj_w": _pad2(L["proj_w"].T, d, dp).astype(jnp.bfloat16),
            "proj_b": jnp.pad(L["proj_b"], (0, dp - d)).reshape(1, dp).astype(jnp.float32),
            "ln2_g": L["ln2_g"].reshape(1, d).astype(jnp.float32),
            "ln2_b": L["ln2_b"].reshape(1, d).astype(jnp.float32),
            "ffn_w1": _pad2(L["ffn_w1"].T, d, mlp_pad).astype(jnp.bfloat16),
            "ffn_b1": jnp.pad(L["ffn_b1"], (0, mlp_pad - mlp)).reshape(1, mlp_pad).astype(jnp.float32),
            "ffn_w2": _pad2(L["ffn_w2"].T, mlp_pad, d).astype(jnp.bfloat16),  # zero rows: hidden pad cols are exactly 0
            "ffn_b2": L["ffn_b2"].reshape(1, d).astype(jnp.float32),
        })
    return {"layers": packed}


# ----------------------------------------------------------------------------
# Shared spatial glue (identical for Pallas forward and pure-JAX reference)
# ----------------------------------------------------------------------------
def _unfold3x3(z):
    # PyTorch Unfold(3): (B, C, hh, ww) -> (B, hh*ww, C, 9)
    B, C, hh, ww = z.shape
    zp = jnp.pad(z, ((0, 0), (0, 0), (1, 1), (1, 1)))
    taps = [zp[:, :, di:di + hh, dj:dj + ww] for di in range(3) for dj in range(3)]
    n = jnp.stack(taps, axis=-1)                                  # (B, C, hh, ww, 9)
    return n.transpose(0, 2, 3, 1, 4).reshape(B, hh * ww, C, 9)


def _fold3x3(y):
    # PyTorch Fold(3) (adjoint of the 3x3 unfold): (Bc, 9, hh, ww) -> (Bc, 1, hh, ww)
    Bc, _, hh, ww = y.shape
    yp = jnp.pad(y, ((0, 0), (0, 0), (1, 1), (1, 1)))
    acc = jnp.zeros((Bc, hh, ww), y.dtype)
    for k in range(9):
        di, dj = k // 3, k % 3
        acc = acc + yp[:, k, 2 - di:2 - di + hh, 2 - dj:2 - dj + ww]
    return acc[:, None]


def _stoken_mix(y, refine_fn, *, stoken_size):
    # Super-token mixing on the *normalized* input y: (B, N, D) -> (B, N, D).
    # TODO(synk): 9-wide affinity softmax and 3x3 fold/unfold stay as XLA glue
    # (shapes are far below a single vreg; no useful Pallas tiling).
    B, N, D = y.shape
    H0 = math.isqrt(N)
    assert H0 * H0 == N, "num_patches must be a perfect square"
    W0 = H0
    xs = y.transpose(0, 2, 1).reshape(B, D, H0, W0)               # 'b (h w) d -> b d h w'
    ss = stoken_size
    pad_b, pad_r = (-H0) % ss, (-W0) % ss
    if pad_b or pad_r:
        xs = jnp.pad(xs, ((0, 0), (0, 0), (0, pad_b), (0, pad_r)))
    H, W = H0 + pad_b, W0 + pad_r
    hh, ww = H // ss, W // ss
    S, P = hh * ww, ss * ss
    scale = D ** -0.5

    blocks = xs.reshape(B, D, hh, ss, ww, ss)
    stoken = blocks.astype(jnp.float32).mean(axis=(3, 5))         # adaptive_avg_pool2d
    pixel = blocks.transpose(0, 2, 4, 3, 5, 1).reshape(B, S, P, D)

    # single affinity iteration (n_iter = 1)
    sunf = _unfold3x3(stoken)                                     # (B, S, D, 9)
    aff = jax.nn.softmax(jnp.einsum("bspc,bsck->bspk", pixel, sunf) * scale, axis=-1)
    aff_sum = _fold3x3(aff.sum(axis=2).transpose(0, 2, 1).reshape(B, 9, hh, ww))

    sf = jnp.einsum("bspc,bspk->bsck", pixel, aff)                # (B, S, D, 9)
    sf = _fold3x3(sf.transpose(0, 2, 3, 1).reshape(B * D, 9, hh, ww)).reshape(B, D, hh, ww)
    sf = sf / (aff_sum + 1e-12)

    sf = refine_fn(sf)                                            # multi-head refine attention

    sunf2 = _unfold3x3(sf)                                        # (B, S, D, 9)
    pix = jnp.einsum("bsck,bspk->bscp", sunf2, aff)               # (B, S, D, P)
    pix = pix.reshape(B, hh, ww, D, ss, ss).transpose(0, 3, 1, 4, 2, 5).reshape(B, D, H, W)
    if pad_b or pad_r:
        pix = pix[:, :, :H0, :W0]
    return pix.transpose(0, 2, 3, 1).reshape(B, N, D)             # 'b d h w -> b (h w) d'


# ----------------------------------------------------------------------------
# Pallas forward
# ----------------------------------------------------------------------------
def _refine_pallas(s, layer, *, num_heads):
    # Attention module: 1x1 qkv conv -> k^T q softmax(dim=-2) -> v @ attn -> 1x1 proj.
    # TODO(synk): the (hh*ww)^2 attention core stays as XLA einsum (a few dozen tokens).
    B, C, hh, ww = s.shape
    Ns = hh * ww
    hd = C // num_heads
    scale = hd ** -0.5
    tok = s.reshape(B, C, Ns).transpose(0, 2, 1).reshape(B * Ns, C)
    qkv = pallas_linear(tok, layer["qkv_w"], None, n_out=3 * C, out_dtype=jnp.bfloat16)
    qkv = qkv.reshape(B, Ns, num_heads, 3 * hd)
    q, k, v = qkv[..., :hd], qkv[..., hd:2 * hd], qkv[..., 2 * hd:]
    attn = jnp.einsum("bihd,bjhd->bhij", k, q,
                      preferred_element_type=jnp.float32) * scale  # i: key, j: query
    attn = jax.nn.softmax(attn, axis=2)                            # PyTorch softmax(dim=-2)
    out = jnp.einsum("bihd,bhij->bjhd", v, attn).reshape(B * Ns, C)
    out = pallas_linear(out, layer["proj_w"], layer["proj_b"], n_out=C)
    return out.reshape(B, Ns, C).transpose(0, 2, 1).reshape(B, C, hh, ww)


def transformer_sta_forward(x, packed_params, *, num_heads, stoken_size=4):
    for layer in packed_params["layers"]:
        B, N, D = x.shape
        # PreNorm (Pallas LN, bf16 out) + super-token attention branch + residual
        y = pallas_layernorm(x.reshape(B * N, D), layer["ln1_g"], layer["ln1_b"]).reshape(B, N, D)
        refine = functools.partial(_refine_pallas, layer=layer, num_heads=num_heads)
        x = x + _stoken_mix(y, refine, stoken_size=stoken_size)
        # Fused PreNorm + FFN + residual (single pallas_call)
        x = pallas_ffn_block(x.reshape(B * N, D), layer).reshape(B, N, D)
    return x


# ----------------------------------------------------------------------------
# Pure-JAX f32 reference (uses the raw PyTorch-layout params)
# ----------------------------------------------------------------------------
def _ref_layernorm(x2d, g, b, *, eps=1e-5):
    mu = x2d.mean(axis=-1, keepdims=True)
    xc = x2d - mu
    var = (xc * xc).mean(axis=-1, keepdims=True)
    return xc / jnp.sqrt(var + eps) * g + b


def _refine_ref(s, layer, *, num_heads):
    B, C, hh, ww = s.shape
    Ns = hh * ww
    hd = C // num_heads
    scale = hd ** -0.5
    tok = s.reshape(B, C, Ns).transpose(0, 2, 1)                   # (B, Ns, C)
    qkv = tok @ layer["qkv_w"].T                                   # qkv_bias=False
    qkv = qkv.reshape(B, Ns, num_heads, 3 * hd)
    q, k, v = qkv[..., :hd], qkv[..., hd:2 * hd], qkv[..., 2 * hd:]
    attn = jnp.einsum("bihd,bjhd->bhij", k, q) * scale
    attn = jax.nn.softmax(attn, axis=2)
    out = jnp.einsum("bihd,bhij->bjhd", v, attn).reshape(B, Ns, C)
    out = out @ layer["proj_w"].T + layer["proj_b"]
    return out.transpose(0, 2, 1).reshape(B, C, hh, ww)


def transformer_sta_reference(x, params, *, num_heads, stoken_size=4):
    for layer in params["layers"]:
        B, N, D = x.shape
        y = _ref_layernorm(x.reshape(B * N, D), layer["ln1_g"], layer["ln1_b"]).reshape(B, N, D)
        refine = functools.partial(_refine_ref, layer=layer, num_heads=num_heads)
        x = x + _stoken_mix(y, refine, stoken_size=stoken_size)
        x2 = x.reshape(B * N, D)
        h = jnp.maximum(_ref_layernorm(x2, layer["ln2_g"], layer["ln2_b"]) @ layer["ffn_w1"].T
                        + layer["ffn_b1"], 0.0)
        x = x + (h @ layer["ffn_w2"].T + layer["ffn_b2"]).reshape(B, N, D)
    return x


# ----------------------------------------------------------------------------
def init_params(key, *, dim, depth, mlp_dim):
    layers = []
    for _ in range(depth):
        key, sub = jax.random.split(key)
        ks = jax.random.split(sub, 11)
        layers.append({
            "ln1_g": 1.0 + 0.1 * jax.random.normal(ks[0], (dim,), jnp.float32),
            "ln1_b": 0.1 * jax.random.normal(ks[1], (dim,), jnp.float32),
            # 1x1 convs of the refine Attention == per-token linear layers
            "qkv_w": 0.1 * jax.random.normal(ks[2], (3 * dim, dim), jnp.float32),
            "proj_w": 0.1 * jax.random.normal(ks[3], (dim, dim), jnp.float32),
            "proj_b": 0.1 * jax.random.normal(ks[4], (dim,), jnp.float32),
            "ln2_g": 1.0 + 0.1 * jax.random.normal(ks[5], (dim,), jnp.float32),
            "ln2_b": 0.1 * jax.random.normal(ks[6], (dim,), jnp.float32),
            # PyTorch Linear layout (out, in)
            "ffn_w1": 0.1 * jax.random.normal(ks[7], (mlp_dim, dim), jnp.float32),
            "ffn_b1": 0.1 * jax.random.normal(ks[8], (mlp_dim,), jnp.float32),
            "ffn_w2": 0.1 * jax.random.normal(ks[9], (dim, mlp_dim), jnp.float32),
            "ffn_b2": 0.1 * jax.random.normal(ks[10], (dim,), jnp.float32),
        })
    return {"layers": layers}


if __name__ == "__main__":
    # Small shapes consistent with the module: (B, num_patches, dim); num_patches
    # must be a perfect square (8x8 token grid), stoken_size=(4,4).
    B, N, DIM = 2, 64, 32
    DEPTH, HEADS, MLP = 2, 4, 64

    root = jax.random.PRNGKey(0)
    k_x, k_p = jax.random.split(root)
    x = jax.random.normal(k_x, (B, N, DIM), dtype=jnp.float32)
    params = init_params(k_p, dim=DIM, depth=DEPTH, mlp_dim=MLP)
    packed = pack_params(params)      # one-time bf16 (in,out)-layout weight packing

    fwd = jax.jit(functools.partial(transformer_sta_forward, num_heads=HEADS))
    ref_fn = jax.jit(functools.partial(transformer_sta_reference, num_heads=HEADS))

    out = jax.block_until_ready(fwd(x, packed))
    ref = jax.block_until_ready(ref_fn(x, params))

    assert out.shape == (B, N, DIM), out.shape
    max_err = float(jnp.max(jnp.abs(out - ref)))
    # bf16 LN output + bf16 MXU operands vs pure-f32 reference
    assert max_err < 6e-2, max_err
    print("KERNEL_OK")
</pallas_src>

<mosaic_0001>
module attributes {stable_mosaic.version = 11 : i64} {
  func.func @_ln_kernel(%arg0: i32, %arg1: memref<64x32xf32, #tpu.memory_space<vmem>>, %arg2: memref<1x32xf32, #tpu.memory_space<vmem>>, %arg3: memref<1x32xf32, #tpu.memory_space<vmem>>, %arg4: memref<64x32xbf16, #tpu.memory_space<vmem>>) attributes {dimension_semantics = [#tpu.dimension_semantics<parallel>], iteration_bounds = array<i64: 2>, scalar_prefetch = 0 : i64, scratch_operands = 0 : i64, tpu.core_type = #tpu.core_type<tc>, window_params = [{transform_indices = @transform_0, window_bounds = array<i64: 64, 32>}, {pipeline_mode = #tpu.pipeline_mode<synchronous>, transform_indices = @transform_1, window_bounds = array<i64: 1, 32>}, {pipeline_mode = #tpu.pipeline_mode<synchronous>, transform_indices = @transform_2, window_bounds = array<i64: 1, 32>}, {transform_indices = @transform_3, window_bounds = array<i64: 64, 32>}]} {
    %c0 = arith.constant 0 : index
    %c0_0 = arith.constant 0 : index
    %0 = vector.load %arg1[%c0, %c0_0] : memref<64x32xf32, #tpu.memory_space<vmem>>, vector<64x32xf32>
    %cst = arith.constant dense<0.000000e+00> : vector<64xf32>
    %1 = vector.multi_reduction <add>, %0, %cst [1] : vector<64x32xf32> to vector<64xf32>
    %2 = vector.shape_cast %1 : vector<64xf32> to vector<64x1xf32>
    %cst_1 = arith.constant 3.200000e+01 : f32
    %3 = vector.broadcast %cst_1 : f32 to vector<64x1xf32>
    %4 = arith.divf %2, %3 : vector<64x1xf32>
    %5 = vector.broadcast %4 : vector<64x1xf32> to vector<64x32xf32>
    %6 = arith.subf %0, %5 : vector<64x32xf32>
    %7 = arith.mulf %6, %6 : vector<64x32xf32>
    %cst_2 = arith.constant dense<0.000000e+00> : vector<64xf32>
    %8 = vector.multi_reduction <add>, %7, %cst_2 [1] : vector<64x32xf32> to vector<64xf32>
    %9 = vector.shape_cast %8 : vector<64xf32> to vector<64x1xf32>
    %cst_3 = arith.constant 3.200000e+01 : f32
    %10 = vector.broadcast %cst_3 : f32 to vector<64x1xf32>
    %11 = arith.divf %9, %10 : vector<64x1xf32>
    %cst_4 = arith.constant 9.99999974E-6 : f32
    %12 = vector.broadcast %cst_4 : f32 to vector<64x1xf32>
    %13 = arith.addf %11, %12 : vector<64x1xf32>
    %14 = math.rsqrt %13 : vector<64x1xf32>
    %15 = vector.broadcast %14 : vector<64x1xf32> to vector<64x32xf32>
    %16 = arith.mulf %6, %15 : vector<64x32xf32>
    %c0_5 = arith.constant 0 : index
    %c0_6 = arith.constant 0 : index
    %17 = vector.load %arg2[%c0_5, %c0_6] : memref<1x32xf32, #tpu.memory_space<vmem>>, vector<1x32xf32>
    %18 = vector.broadcast %17 : vector<1x32xf32> to vector<64x32xf32>
    %19 = arith.mulf %16, %18 : vector<64x32xf32>
    %c0_7 = arith.constant 0 : index
    %c0_8 = arith.constant 0 : index
    %20 = vector.load %arg3[%c0_7, %c0_8] : memref<1x32xf32, #tpu.memory_space<vmem>>, vector<1x32xf32>
    %21 = vector.broadcast %20 : vector<1x32xf32> to vector<64x32xf32>
    %22 = arith.addf %19, %21 : vector<64x32xf32>
    %23 = arith.truncf %22 : vector<64x32xf32> to vector<64x32xbf16>
    %c0_9 = arith.constant 0 : index
    %c0_10 = arith.constant 0 : index
    %24 = vector.load %arg4[%c0_9, %c0_10] : memref<64x32xbf16, #tpu.memory_space<vmem>>, vector<64x32xbf16>
    tpu.vector_store %arg4[%c0_9, %c0_10], %23 {strides = array<i32>} : memref<64x32xbf16, #tpu.memory_space<vmem>>, vector<64x32xbf16>,
    return
  }
  func.func @transform_0(%arg0: i32) -> (i32, i32) {
    %c0_i32 = arith.constant 0 : i32
    %c0_i32_0 = arith.constant 0 : i32
    return %arg0, %c0_i32 : i32, i32
  }
  func.func @transform_1(%arg0: i32) -> (i32, i32) {
    %c0_i32 = arith.constant 0 : i32
    %c0_i32_0 = arith.constant 0 : i32
    %c0_i32_1 = arith.constant 0 : i32
    return %c0_i32, %c0_i32_0 : i32, i32
  }
  func.func @transform_2(%arg0: i32) -> (i32, i32) {
    %c0_i32 = arith.constant 0 : i32
    %c0_i32_0 = arith.constant 0 : i32
    %c0_i32_1 = arith.constant 0 : i32
    return %c0_i32, %c0_i32_0 : i32, i32
  }
  func.func @transform_3(%arg0: i32) -> (i32, i32) {
    %c0_i32 = arith.constant 0 : i32
    %c0_i32_0 = arith.constant 0 : i32
    return %arg0, %c0_i32 : i32, i32
  }
}

module attributes {stable_mosaic.version = 11 : i64} {
  func.func @_gemm_kernel(%arg0: i32, %arg1: memref<16x32xbf16, #tpu.memory_space<vmem>>, %arg2: memref<32x128xbf16, #tpu.memory_space<vmem>>, %arg3: memref<16x128xbf16, #tpu.memory_space<vmem>>) attributes {dimension_semantics = [#tpu.dimension_semantics<parallel>], iteration_bounds = array<i64: 1>, scalar_prefetch = 0 : i64, scratch_operands = 0 : i64, tpu.core_type = #tpu.core_type<tc>, window_params = [{transform_indices = @transform_0, window_bounds = array<i64: 16, 32>}, {pipeline_mode = #tpu.pipeline_mode<synchronous>, transform_indices = @transform_1, window_bounds = array<i64: 32, 128>}, {transform_indices = @transform_2, window_bounds = array<i64: 16, 128>}]} {
    %c0 = arith.constant 0 : index
    %c0_0 = arith.constant 0 : index
    %0 = vector.load %arg1[%c0, %c0_0] : memref<16x32xbf16, #tpu.memory_space<vmem>>, vector<16x32xbf16>
    %c0_1 = arith.constant 0 : index
    %c0_2 = arith.constant 0 : index
    %1 = vector.load %arg2[%c0_1, %c0_2] : memref<32x128xbf16, #tpu.memory_space<vmem>>, vector<32x128xbf16>
    %cst = arith.constant dense<0.000000e+00> : vector<16x128xf32>
    %2 = tpu.matmul %0, %1, %cst {dimension_numbers = #tpu.dot_dimension_numbers<[1], [0], [0], [1], [0, 0, 1, 1], [], []>} : vector<16x32xbf16>, vector<32x128xbf16>, vector<16x128xf32> -> vector<16x128xf32>
    %3 = arith.truncf %2 : vector<16x128xf32> to vector<16x128xbf16>
    %c0_3 = arith.constant 0 : index
    %c0_4 = arith.constant 0 : index
    %4 = vector.load %arg3[%c0_3, %c0_4] : memref<16x128xbf16, #tpu.memory_space<vmem>>, vector<16x128xbf16>
    tpu.vector_store %arg3[%c0_3, %c0_4], %3 {strides = array<i32>} : memref<16x128xbf16, #tpu.memory_space<vmem>>, vector<16x128xbf16>,
    return
  }
  func.func @transform_0(%arg0: i32) -> (i32, i32) {
    %c0_i32 = arith.constant 0 : i32
    %c0_i32_0 = arith.constant 0 : i32
    return %arg0, %c0_i32 : i32, i32
  }
  func.func @transform_1(%arg0: i32) -> (i32, i32) {
    %c0_i32 = arith.constant 0 : i32
    %c0_i32_0 = arith.constant 0 : i32
    %c0_i32_1 = arith.constant 0 : i32
    return %c0_i32, %c0_i32_0 : i32, i32
  }
  func.func @transform_2(%arg0: i32) -> (i32, i32) {
    %c0_i32 = arith.constant 0 : i32
    %c0_i32_0 = arith.constant 0 : i32
    return %arg0, %c0_i32 : i32, i32
  }
}

module attributes {stable_mosaic.version = 11 : i64} {
  func.func @_gemm_bias_kernel(%arg0: i32, %arg1: memref<16x32xbf16, #tpu.memory_space<vmem>>, %arg2: memref<32x128xbf16, #tpu.memory_space<vmem>>, %arg3: memref<1x128xf32, #tpu.memory_space<vmem>>, %arg4: memref<16x128xf32, #tpu.memory_space<vmem>>) attributes {dimension_semantics = [#tpu.dimension_semantics<parallel>], iteration_bounds = array<i64: 1>, scalar_prefetch = 0 : i64, scratch_operands = 0 : i64, tpu.core_type = #tpu.core_type<tc>, window_params = [{transform_indices = @transform_0, window_bounds = array<i64: 16, 32>}, {pipeline_mode = #tpu.pipeline_mode<synchronous>, transform_indices = @transform_1, window_bounds = array<i64: 32, 128>}, {pipeline_mode = #tpu.pipeline_mode<synchronous>, transform_indices = @transform_2, window_bounds = array<i64: 1, 128>}, {transform_indices = @transform_3, window_bounds = array<i64: 16, 128>}]} {
    %c0 = arith.constant 0 : index
    %c0_0 = arith.constant 0 : index
    %0 = vector.load %arg1[%c0, %c0_0] : memref<16x32xbf16, #tpu.memory_space<vmem>>, vector<16x32xbf16>
    %c0_1 = arith.constant 0 : index
    %c0_2 = arith.constant 0 : index
    %1 = vector.load %arg2[%c0_1, %c0_2] : memref<32x128xbf16, #tpu.memory_space<vmem>>, vector<32x128xbf16>
    %cst = arith.constant dense<0.000000e+00> : vector<16x128xf32>
    %2 = tpu.matmul %0, %1, %cst {dimension_numbers = #tpu.dot_dimension_numbers<[1], [0], [0], [1], [0, 0, 1, 1], [], []>} : vector<16x32xbf16>, vector<32x128xbf16>, vector<16x128xf32> -> vector<16x128xf32>
    %c0_3 = arith.constant 0 : index
    %c0_4 = arith.constant 0 : index
    %3 = vector.load %arg3[%c0_3, %c0_4] : memref<1x128xf32, #tpu.memory_space<vmem>>, vector<1x128xf32>
    %4 = vector.broadcast %3 : vector<1x128xf32> to vector<16x128xf32>
    %5 = arith.addf %2, %4 : vector<16x128xf32>
    %c0_5 = arith.constant 0 : index
    %c0_6 = arith.constant 0 : index
    %6 = vector.load %arg4[%c0_5, %c0_6] : memref<16x128xf32, #tpu.memory_space<vmem>>, vector<16x128xf32>
    tpu.vector_store %arg4[%c0_5, %c0_6], %5 {strides = array<i32>} : memref<16x128xf32, #tpu.memory_space<vmem>>, vector<16x128xf32>,
    return
  }
  func.func @transform_0(%arg0: i32) -> (i32, i32) {
    %c0_i32 = arith.constant 0 : i32
    %c0_i32_0 = arith.constant 0 : i32
    return %arg0, %c0_i32 : i32, i32
  }
  func.func @transform_1(%arg0: i32) -> (i32, i32) {
    %c0_i32 = arith.constant 0 : i32
    %c0_i32_0 = arith.constant 0 : i32
    %c0_i32_1 = arith.constant 0 : i32
    return %c0_i32, %c0_i32_0 : i32, i32
  }
  func.func @transform_2(%arg0: i32) -> (i32, i32) {
    %c0_i32 = arith.constant 0 : i32
    %c0_i32_0 = arith.constant 0 : i32
    %c0_i32_1 = arith.constant 0 : i32
    return %c0_i32, %c0_i32_0 : i32, i32
  }
  func.func @transform_3(%arg0: i32) -> (i32, i32) {
    %c0_i32 = arith.constant 0 : i32
    %c0_i32_0 = arith.constant 0 : i32
    return %arg0, %c0_i32 : i32, i32
  }
}

module attributes {stable_mosaic.version = 11 : i64} {
  func.func @_ffn_fused_kernel(%arg0: i32, %arg1: memref<64x32xf32, #tpu.memory_space<vmem>>, %arg2: memref<1x32xf32, #tpu.memory_space<vmem>>, %arg3: memref<1x32xf32, #tpu.memory_space<vmem>>, %arg4: memref<32x128xbf16, #tpu.memory_space<vmem>>, %arg5: memref<1x128xf32, #tpu.memory_space<vmem>>, %arg6: memref<128x32xbf16, #tpu.memory_space<vmem>>, %arg7: memref<1x32xf32, #tpu.memory_space<vmem>>, %arg8: memref<64x32xf32, #tpu.memory_space<vmem>>) attributes {dimension_semantics = [#tpu.dimension_semantics<parallel>], iteration_bounds = array<i64: 2>, scalar_prefetch = 0 : i64, scratch_operands = 0 : i64, tpu.core_type = #tpu.core_type<tc>, window_params = [{transform_indices = @transform_0, window_bounds = array<i64: 64, 32>}, {pipeline_mode = #tpu.pipeline_mode<synchronous>, transform_indices = @transform_1, window_bounds = array<i64: 1, 32>}, {pipeline_mode = #tpu.pipeline_mode<synchronous>, transform_indices = @transform_2, window_bounds = array<i64: 1, 32>}, {pipeline_mode = #tpu.pipeline_mode<synchronous>, transform_indices = @transform_3, window_bounds = array<i64: 32, 128>}, {pipeline_mode = #tpu.pipeline_mode<synchronous>, transform_indices = @transform_4, window_bounds = array<i64: 1, 128>}, {pipeline_mode = #tpu.pipeline_mode<synchronous>, transform_indices = @transform_5, window_bounds = array<i64: 128, 32>}, {pipeline_mode = #tpu.pipeline_mode<synchronous>, transform_indices = @transform_6, window_bounds = array<i64: 1, 32>}, {transform_indices = @transform_7, window_bounds = array<i64: 64, 32>}]} {
    %c0 = arith.constant 0 : index
    %c0_0 = arith.constant 0 : index
    %0 = vector.load %arg1[%c0, %c0_0] : memref<64x32xf32, #tpu.memory_space<vmem>>, vector<64x32xf32>
    %cst = arith.constant dense<0.000000e+00> : vector<64xf32>
    %1 = vector.multi_reduction <add>, %0, %cst [1] : vector<64x32xf32> to vector<64xf32>
    %2 = vector.shape_cast %1 : vector<64xf32> to vector<64x1xf32>
    %cst_1 = arith.constant 3.200000e+01 : f32
    %3 = vector.broadcast %cst_1 : f32 to vector<64x1xf32>
    %4 = arith.divf %2, %3 : vector<64x1xf32>
    %5 = vector.broadcast %4 : vector<64x1xf32> to vector<64x32xf32>
    %6 = arith.subf %0, %5 : vector<64x32xf32>
    %7 = arith.mulf %6, %6 : vector<64x32xf32>
    %cst_2 = arith.constant dense<0.000000e+00> : vector<64xf32>
    %8 = vector.multi_reduction <add>, %7, %cst_2 [1] : vector<64x32xf32> to vector<64xf32>
    %9 = vector.shape_cast %8 : vector<64xf32> to vector<64x1xf32>
    %cst_3 = arith.constant 3.200000e+01 : f32
    %10 = vector.broadcast %cst_3 : f32 to vector<64x1xf32>
    %11 = arith.divf %9, %10 : vector<64x1xf32>
    %cst_4 = arith.constant 9.99999974E-6 : f32
    %12 = vector.broadcast %cst_4 : f32 to vector<64x1xf32>
    %13 = arith.addf %11, %12 : vector<64x1xf32>
    %14 = math.rsqrt %13 : vector<64x1xf32>
    %15 = vector.broadcast %14 : vector<64x1xf32> to vector<64x32xf32>
    %16 = arith.mulf %6, %15 : vector<64x32xf32>
    %c0_5 = arith.constant 0 : index
    %c0_6 = arith.constant 0 : index
    %17 = vector.load %arg2[%c0_5, %c0_6] : memref<1x32xf32, #tpu.memory_space<vmem>>, vector<1x32xf32>
    %18 = vector.broadcast %17 : vector<1x32xf32> to vector<64x32xf32>
    %19 = arith.mulf %16, %18 : vector<64x32xf32>
    %c0_7 = arith.constant 0 : index
    %c0_8 = arith.constant 0 : index
    %20 = vector.load %arg3[%c0_7, %c0_8] : memref<1x32xf32, #tpu.memory_space<vmem>>, vector<1x32xf32>
    %21 = vector.broadcast %20 : vector<1x32xf32> to vector<64x32xf32>
    %22 = arith.addf %19, %21 : vector<64x32xf32>
    %23 = arith.truncf %22 : vector<64x32xf32> to vector<64x32xbf16>
    %c0_9 = arith.constant 0 : index
    %c0_10 = arith.constant 0 : index
    %24 = vector.load %arg4[%c0_9, %c0_10] : memref<32x128xbf16, #tpu.memory_space<vmem>>, vector<32x128xbf16>
    %cst_11 = arith.constant dense<0.000000e+00> : vector<64x128xf32>
    %25 = tpu.matmul %23, %24, %cst_11 {dimension_numbers = #tpu.dot_dimension_numbers<[1], [0], [0], [1], [0, 0, 1, 1], [], []>} : vector<64x32xbf16>, vector<32x128xbf16>, vector<64x128xf32> -> vector<64x128xf32>
    %c0_12 = arith.constant 0 : index
    %c0_13 = arith.constant 0 : index
    %26 = vector.load %arg5[%c0_12, %c0_13] : memref<1x128xf32, #tpu.memory_space<vmem>>, vector<1x128xf32>
    %27 = vector.broadcast %26 : vector<1x128xf32> to vector<64x128xf32>
    %28 = arith.addf %25, %27 : vector<64x128xf32>
    %cst_14 = arith.constant 0.000000e+00 : f32
    %29 = vector.broadcast %cst_14 : f32 to vector<64x128xf32>
    %30 = arith.maximumf %28, %29 : vector<64x128xf32>
    %31 = arith.truncf %30 : vector<64x128xf32> to vector<64x128xbf16>
    %c0_15 = arith.constant 0 : index
    %c0_16 = arith.constant 0 : index
    %32 = vector.load %arg6[%c0_15, %c0_16] : memref<128x32xbf16, #tpu.memory_space<vmem>>, vector<128x32xbf16>
    %cst_17 = arith.constant dense<0.000000e+00> : vector<64x32xf32>
    %33 = tpu.matmul %31, %32, %cst_17 {dimension_numbers = #tpu.dot_dimension_numbers<[1], [0], [0], [1], [0, 0, 1, 1], [], []>} : vector<64x128xbf16>, vector<128x32xbf16>, vector<64x32xf32> -> vector<64x32xf32>
    %34 = arith.addf %0, %33 : vector<64x32xf32>
    %c0_18 = arith.constant 0 : index
    %c0_19 = arith.constant 0 : index
    %35 = vector.load %arg7[%c0_18, %c0_19] : memref<1x32xf32, #tpu.memory_space<vmem>>, vector<1x32xf32>
    %36 = vector.broadcast %35 : vector<1x32xf32> to vector<64x32xf32>
    %37 = arith.addf %34, %36 : vector<64x32xf32>
    %c0_20 = arith.constant 0 : index
    %c0_21 = arith.constant 0 : index
    %38 = vector.load %arg8[%c0_20, %c0_21] : memref<64x32xf32, #tpu.memory_space<vmem>>, vector<64x32xf32>
    tpu.vector_store %arg8[%c0_20, %c0_21], %37 {strides = array<i32>} : memref<64x32xf32, #tpu.memory_space<vmem>>, vector<64x32xf32>,
    return
  }
  func.func @transform_0(%arg0: i32) -> (i32, i32) {
    %c0_i32 = arith.constant 0 : i32
    %c0_i32_0 = arith.constant 0 : i32
    return %arg0, %c0_i32 : i32, i32
  }
  func.func @transform_1(%arg0: i32) -> (i32, i32) {
    %c0_i32 = arith.constant 0 : i32
    %c0_i32_0 = arith.constant 0 : i32
    %c0_i32_1 = arith.constant 0 : i32
    return %c0_i32, %c0_i32_0 : i32, i32
  }
  func.func @transform_2(%arg0: i32) -> (i32, i32) {
    %c0_i32 = arith.constant 0 : i32
    %c0_i32_0 = arith.constant 0 : i32
    %c0_i32_1 = arith.constant 0 : i32
    return %c0_i32, %c0_i32_0 : i32, i32
  }
  func.func @transform_3(%arg0: i32) -> (i32, i32) {
    %c0_i32 = arith.constant 0 : i32
    %c0_i32_0 = arith.constant 0 : i32
    %c0_i32_1 = arith.constant 0 : i32
    return %c0_i32, %c0_i32_0 : i32, i32
  }
  func.func @transform_4(%arg0: i32) -> (i32, i32) {
    %c0_i32 = arith.constant 0 : i32
    %c0_i32_0 = arith.constant 0 : i32
    %c0_i32_1 = arith.constant 0 : i32
    return %c0_i32, %c0_i32_0 : i32, i32
  }
  func.func @transform_5(%arg0: i32) -> (i32, i32) {
    %c0_i32 = arith.constant 0 : i32
    %c0_i32_0 = arith.constant 0 : i32
    %c0_i32_1 = arith.constant 0 : i32
    return %c0_i32, %c0_i32_0 : i32, i32
  }
  func.func @transform_6(%arg0: i32) -> (i32, i32) {
    %c0_i32 = arith.constant 0 : i32
    %c0_i32_0 = arith.constant 0 : i32
    %c0_i32_1 = arith.constant 0 : i32
    return %c0_i32, %c0_i32_0 : i32, i32
  }
  func.func @transform_7(%arg0: i32) -> (i32, i32) {
    %c0_i32 = arith.constant 0 : i32
    %c0_i32_0 = arith.constant 0 : i32
    return %arg0, %c0_i32 : i32, i32
  }
}

</mosaic_0001>

<bundles_post_ra>
// kernel: transformer_sta_forward.8
= control target key start
LH: loop header
LB: loop body
LE: loop exit
PB: predicated region body
PF: predicated region fallthrough
CT: control target
= control target key end

     0   :  { %s496_s12 = smov 0   ;;  %s597_s0 = inlined_call_operand.vmem [shape: f32[128,32], index: 0, kind: input, shape index: {}]   ;;  %s598_s1 = inlined_call_operand.vmem [shape: f32[1,32], index: 1, kind: input, shape index: {}]   ;;  %s599_s2 = inlined_call_operand.vmem [shape: f32[1,32], index: 2, kind: input, shape index: {}]   ;;  %s600_s3 = inlined_call_operand.vmem [shape: bf16[128,32], index: 3, kind: output, shape index: {}]  }
   0x1 LB: > { %s415_s13 = sadd.s32 4294967295, %s474_s12   ;;  %p419_p0 = scmp.ge.s32.totalorder %s474_s12, 1  ;;  %s474_s12 = sphi %s496_s12, %s13_s12  }
   0x2   : > { %p138_p1 = scmp.lt.s32.totalorder %s474_s12, 3 }
   0x4   : > { %p139_p2 = pnand %p419_p0, %p138_p1 }
   0x5   : > { %s420_s14 = sshll.u32 (!%p139_p2), %s415_s13, 3  ;;  %vm182_vm0 = vcmask (!%p139_p2), 261120   ;;  %vm350_vm1 = vcmask (!%p139_p2), 257024  }
   0x6   : > { %142 = sbr.rel (%p139_p2) target bundleno = 349 (0x15d), region = 32  ;;  %p163_p3 = scmp.lt.s32.totalorder (!%p139_p2), %s420_s14, 15 }
   0xd   : > { %s602_s14 = smov (!%p163_p3, %s420_s14), 15 }
   0xe   : > { %s421_s15 = sshll.u32 %s602_s14, 3  ;;  %s423_s23 = sshll.u32 %s602_s14, 2 }
   0xf   : > { %s166_s18 = scalar_lea.vmem %s597_s0, %s421_s15  ;;  %s570_s26 = scalar_lea.vmem %s600_s3, %s423_s23 }
  0x10   : > { %v174_v0 = vld [vmem:[%s166_s18] sm:$0xff]  ;;  %v176_v1 = vld [vmem:[%s166_s18 + $0x10] sm:$0xff]  ;;  %v175_v2 = vld [vmem:[%s166_s18 + $0x8] sm:$0xff] }
  0x11   : > { %v183_v3 = vsel %vm182_vm0, %v174_v0, 0.0  ;;  %v189_v4 = vsel %vm182_vm0, %v176_v1, 0.0  ;;  %v177_v5 = vld [vmem:[%s166_s18 + $0x18] sm:$0xff]  ;;  %v186_v6 = vsel %vm182_vm0, %v175_v2, 0.0  ;;  %v178_v8 = vld [vmem:[%s166_s18 + $0x20] sm:$0xff]  ;;  %v179_v9 = vld [vmem:[%s166_s18 + $0x28] sm:$0xff] }
  0x12   : > { %184 = vadd.xlane.f32.xlu0 %v183_v3  ;;  %190 = vadd.xlane.f32.xlu1 %v189_v4  ;;  %v192_v7 = vsel %vm182_vm0, %v177_v5, 0.0  ;;  %v195_v10 = vsel %vm182_vm0, %v178_v8, 0.0  ;;  %v198_v11 = vsel %vm182_vm0, %v179_v9, 0.0  ;;  %v180_v12 = vld [vmem:[%s166_s18 + $0x30] sm:$0xff]  ;;  %v181_v13 = vld [vmem:[%s166_s18 + $0x38] sm:$0xff] }
  0x13   : > { %v201_v14 = vsel %vm182_vm0, %v180_v12, 0.0  ;;  %v204_v15 = vsel %vm182_vm0, %v181_v13, 0.0 }
  0x16   : > { %187 = vadd.xlane.f32.xlu0 %v186_v6  ;;  %193 = vadd.xlane.f32.xlu1 %v192_v7 }
  0x1a   : > { %196 = vadd.xlane.f32.xlu0 %v195_v10  ;;  %199 = vadd.xlane.f32.xlu1 %v198_v11 }
  0x1e   : > { %202 = vadd.xlane.f32.xlu0 %v201_v14  ;;  %205 = vadd.xlane.f32.xlu1 %v204_v15 }
  0x9f   : > { %v185_v16 = vpop.xlane.xlu0 %184  ;;  %v191_v17 = vpop.xlane.xlu1 %190 }
  0xa0   : > { %v208_v18 = vmul.f32 0.03125, %v185_v16  ;;  %v210_v19 = vmul.f32 0.03125, %v191_v17  ;;  %v425_v17 = vld [vmem:[%s599_s2] ss:$0 sm:$0xff] }
  0xa2   : > { %v518_v20 = vsub.f32 %v174_v0, %v208_v18  ;;  %v520_v21 = vsub.f32 %v176_v1, %v210_v19 }
  0xa3   : > { %v188_v22 = vpop.xlane.xlu0 %187  ;;  %v194_v23 = vpop.xlane.xlu1 %193 }
  0xa4   : > { %v209_v24 = vmul.f32 0.03125, %v188_v22  ;;  %v211_v25 = vmul.f32 0.03125, %v194_v23  ;;  %v224_v26 = vmul.f32 %v518_v20, %v518_v20  ;;  %v226_v27 = vmul.f32 %v520_v21, %v520_v21 }
  0xa6   : > { %v526_v28 = vsub.f32 %v175_v2, %v209_v24  ;;  %v528_v29 = vsub.f32 %v177_v5, %v211_v25  ;;  %v232_v30 = vsel %vm182_vm0, %v224_v26, 0.0  ;;  %v238_v33 = vsel %vm182_vm0, %v226_v27, 0.0 }
  0xa7   : > { %233 = vadd.xlane.f32.xlu0 %v232_v30  ;;  %v197_v31 = vpop.xlane.xlu0 %196  ;;  %v200_v32 = vpop.xlane.xlu1 %199 }
  0xa8   : > { %v212_v34 = vmul.f32 0.03125, %v197_v31  ;;  %v213_v35 = vmul.f32 0.03125, %v200_v32  ;;  %v225_v36 = vmul.f32 %v526_v28, %v526_v28  ;;  %v227_v37 = vmul.f32 %v528_v29, %v528_v29 }
  0xaa   : > { %v536_v38 = vsub.f32 %v178_v8, %v212_v34  ;;  %v538_v39 = vsub.f32 %v179_v9, %v213_v35  ;;  %v235_v40 = vsel %vm182_vm0, %v225_v36, 0.0  ;;  %v241_v43 = vsel %vm182_vm0, %v227_v37, 0.0 }
  0xab   : > { %239 = vadd.xlane.f32.xlu0 %v238_v33  ;;  %236 = vadd.xlane.f32.xlu1 %v235_v40  ;;  %v203_v41 = vpop.xlane.xlu0 %202  ;;  %v206_v42 = vpop.xlane.xlu1 %205 }
  0xac   : > { %v214_v44 = vmul.f32 0.03125, %v203_v41  ;;  %v215_v45 = vmul.f32 0.03125, %v206_v42  ;;  %v228_v46 = vmul.f32 %v536_v38, %v536_v38  ;;  %v229_v47 = vmul.f32 %v538_v39, %v538_v39 }
  0xae   : > { %v546_v48 = vsub.f32 %v180_v12, %v214_v44  ;;  %v548_v49 = vsub.f32 %v181_v13, %v215_v45  ;;  %v244_v50 = vsel %vm182_vm0, %v228_v46, 0.0  ;;  %v247_v51 = vsel %vm182_vm0, %v229_v47, 0.0  ;;  %v424_v12 = vld [vmem:[%s598_s1] ss:$0 sm:$0xff] }
  0xaf   : > { %242 = vadd.xlane.f32.xlu1 %v241_v43  ;;  %245 = vadd.xlane.f32.xlu0 %v244_v50 }
  0xb0   : > { %v230_v52 = vmul.f32 %v546_v48, %v546_v48  ;;  %v231_v53 = vmul.f32 %v548_v49, %v548_v49 }
  0xb2   : > { %v250_v54 = vsel %vm182_vm0, %v230_v52, 0.0  ;;  %v253_v55 = vsel %vm182_vm0, %v231_v53, 0.0 }
  0xb3   : > { %248 = vadd.xlane.f32.xlu1 %v247_v51  ;;  %251 = vadd.xlane.f32.xlu0 %v250_v54 }
  0xb7   : > { %254 = vadd.xlane.f32.xlu1 %v253_v55 }
 0x134   : > { %v234_v56 = vpop.xlane.xlu0 %233 }
 0x135   : > { %v256_v57 = vmul.f32 0.03125, %v234_v56 }
 0x137   : > { %v264_v58 = vadd.f32 1e-05, %v256_v57 }
 0x138   : > { %v237_v59 = vpop.xlane.xlu1 %236  ;;  %v240_v60 = vpop.xlane.xlu0 %239 }
 0x139   : > { %452 = vrsqrt.f32 %v264_v58  ;;  %v257_v61 = vmul.f32 0.03125, %v237_v59  ;;  %v258_v62 = vmul.f32 0.03125, %v240_v60 }
 0x13b   : > { %v265_v63 = vadd.f32 1e-05, %v257_v61  ;;  %v266_v0 = vadd.f32 1e-05, %v258_v62 }
 0x13c   : > { %v243_v1 = vpop.xlane.xlu1 %242  ;;  %v246_v2 = vpop.xlane.xlu0 %245 }
 0x13d   : > { %454 = vrsqrt.f32 %v265_v63  ;;  %v259_v3 = vmul.f32 0.03125, %v243_v1  ;;  %v260_v4 = vmul.f32 0.03125, %v246_v2 }
 0x13e   : > { %456 = vrsqrt.f32 %v266_v0 }
 0x13f   : > { %v267_v5 = vadd.f32 1e-05, %v259_v3  ;;  %v268_v6 = vadd.f32 1e-05, %v260_v4 }
 0x140   : > { %v249_v7 = vpop.xlane.xlu1 %248  ;;  %v252_v8 = vpop.xlane.xlu0 %251 }
 0x141   : > { %458 = vrsqrt.f32 %v267_v5  ;;  %v261_v9 = vmul.f32 0.03125, %v249_v7  ;;  %v262_v10 = vmul.f32 0.03125, %v252_v8 }
 0x142   : > { %460 = vrsqrt.f32 %v268_v6 }
 0x143   : > { %v453_v11 = vpop.eup %452  ;;  %v269_v13 = vadd.f32 1e-05, %v261_v9  ;;  %v270_v14 = vadd.f32 1e-05, %v262_v10 }
 0x144   : > { %v280_v15 = vmul.f32 %v453_v11, %v518_v20  ;;  %v255_v16 = vpop.xlane.xlu1 %254 }
 0x145   : > { %462 = vrsqrt.f32 %v269_v13  ;;  %v263_v18 = vmul.f32 0.03125, %v255_v16 }
 0x146   : > { %v295_v19 = vmul.f32 %v424_v12, %v280_v15  ;;  %464 = vrsqrt.f32 %v270_v14 }
 0x147   : > { %v455_v22 = vpop.eup %454  ;;  %v271_v23 = vadd.f32 1e-05, %v263_v18 }
 0x148   : > { %v457_v24 = vpop.eup %456  ;;  %v310_v25 = vadd.f32 %v425_v17, %v295_v19  ;;  %v281_v26 = vmul.f32 %v455_v22, %v526_v28 }
 0x149   : > { %v282_v20 = vmul.f32 %v457_v24, %v520_v21  ;;  %466 = vrsqrt.f32 %v271_v23 }
 0x14a   : > { %v436_v27 = vpack.c.bf16 %v310_v25, %v310_v25  ;;  %v296_v30 = vmul.f32 %v424_v12, %v281_v26 }
 0x14b   : > { %v459_v31 = vpop.eup %458  ;;  %v297_v32 = vmul.f32 %v424_v12, %v282_v20 }
 0x14c   : > { %v461_v33 = vpop.eup %460  ;;  %351 = vst.msk [vmem:[%s570_s26] sm:$0xf] %vm350_vm1, %v436_v27  ;;  %v311_v28 = vadd.f32 %v425_v17, %v296_v30  ;;  %v283_v34 = vmul.f32 %v459_v31, %v528_v29 }
 0x14d   : > { %v312_v35 = vadd.f32 %v425_v17, %v297_v32  ;;  %v284_v36 = vmul.f32 %v461_v33, %v536_v38 }
 0x14e   : > { %v437_v37 = vpack.c.bf16 %v311_v28, %v311_v28  ;;  %v298_v40 = vmul.f32 %v424_v12, %v283_v34 }
 0x14f   : > { %v463_v21 = vpop.eup %462  ;;  %v438_v41 = vpack.c.bf16 %v312_v35, %v312_v35  ;;  %v299_v42 = vmul.f32 %v424_v12, %v284_v36 }
 0x150   : > { %v465_v43 = vpop.eup %464  ;;  %352 = vst.msk [vmem:[%s570_s26 + $0x4] sm:$0xf] %vm350_vm1, %v437_v37  ;;  %v313_v44 = vadd.f32 %v425_v17, %v298_v40  ;;  %v285_v45 = vmul.f32 %v463_v21, %v538_v39 }
 0x151   : > { %353 = vst.msk [vmem:[%s570_s26 + $0x8] sm:$0xf] %vm350_vm1, %v438_v41  ;;  %v314_v29 = vadd.f32 %v425_v17, %v299_v42  ;;  %v286_v46 = vmul.f32 %v465_v43, %v546_v48 }
 0x152   : > { %v439_v38 = vpack.c.bf16 %v313_v44, %v313_v44  ;;  %v300_v47 = vmul.f32 %v424_v12, %v285_v45 }
 0x153   : > { %v467_v50 = vpop.eup %466  ;;  %v440_v51 = vpack.c.bf16 %v314_v29, %v314_v29  ;;  %v301_v52 = vmul.f32 %v424_v12, %v286_v46 }
 0x154   : > { %354 = vst.msk [vmem:[%s570_s26 + $0xc] sm:$0xf] %vm350_vm1, %v439_v38  ;;  %v315_v53 = vadd.f32 %v425_v17, %v300_v47  ;;  %v287_v54 = vmul.f32 %v467_v50, %v548_v49 }
 0x155   : > { %355 = vst.msk [vmem:[%s570_s26 + $0x10] sm:$0xf] %vm350_vm1, %v440_v51  ;;  %v316_v39 = vadd.f32 %v425_v17, %v301_v52 }
 0x156   : > { %v441_v55 = vpack.c.bf16 %v315_v53, %v315_v53  ;;  %v302_v56 = vmul.f32 %v424_v12, %v287_v54 }
 0x157   : > { %v442_v57 = vpack.c.bf16 %v316_v39, %v316_v39 }
 0x158   : > { %356 = vst.msk [vmem:[%s570_s26 + $0x14] sm:$0xf] %vm350_vm1, %v441_v55  ;;  %v317_v48 = vadd.f32 %v425_v17, %v302_v56 }
 0x159   : > { %357 = vst.msk [vmem:[%s570_s26 + $0x18] sm:$0xf] %vm350_vm1, %v442_v57 }
 0x15a   : > { %v443_v58 = vpack.c.bf16 %v317_v48, %v317_v48 }
 0x15c   : > { %358 = vst.msk [vmem:[%s570_s26 + $0x1c] sm:$0xf] %vm350_vm1, %v443_v58 }
 0x15d PF: > { %s13_s12 = sadd.s32 1, %s474_s12  }
 0x15e   : > { %p10_p4 = scmp.ge.s32.totalorder %s13_s12, 4  }
 0x160   :  { %12 = sbr.rel (!%p10_p4) target bundleno = 1 (0x1), region = 62 }

// kernel: transformer_sta_forward.9
= control target key start
LH: loop header
LB: loop body
LE: loop exit
PB: predicated region body
PF: predicated region fallthrough
CT: control target
= control target key end

     0   :  { %v123_v0 = vmov 0.0   ;;  %vm124_vm0 = vmmov 0   ;;  %vm35_vm1 = vcmask 261120   ;;  %s152_s1 = inlined_call_operand.vmem [shape: bf16[32,128], index: 1, kind: input, shape index: {}]   ;;  %s153_s0 = inlined_call_operand.vmem [shape: bf16[16,32], index: 0, kind: input, shape index: {}]   ;;  %s154_s2 = inlined_call_operand.vmem [shape: bf16[16,128], index: 2, kind: output, shape index: {}]  }
   0x1   :  { %110 = vmatprep.subr.bf16.mxu0 %v123_v0  ;;  %v120_v1 = vld [vmem:[%s152_s1] sm:$0xff]   ;;  %114 = vmatprep.mubr.msk.bf16.mxu0 %vm124_vm0, %v123_v0  ;;  %v121_v2 = vld [vmem:[%s152_s1 + $0x8] sm:$0xff]  }
   0x2   :  { %111 = vmatpush3.bf16.msra.mxu0 %v120_v1  ;;  %v122_v3 = vld [vmem:[%s153_s0] sm:$0xff]  }
   0x3   :  { %112 = vmatprep.subr.bf16.mxu0 %v123_v0 }
   0x6   :  { %113 = vmatpush3.bf16.msra.mxu0 %v121_v2 }
   0x9   :  { %115 = vmatmul.mubr.msk.bf16.vlgmr.msra.gmra.mrb[0].mxu0 %vm35_vm1, %v122_v3 }
  0xdc   :  { %v73_v4 = vpop.f32.mrb[0].mxu0 }
  0xdd   :  { %v116_v5 = vpop.f32.mrb[1].mxu0 }
  0xde   :  { %v76_v6 = vpop.f32.mrb[2].mxu0 }
  0xdf   :  { %v105_v7 = vpack.c.bf16 %v76_v6, %v73_v4  ;;  %v117_v8 = vpop.f32.mrb[3].mxu0 }
  0xe1   :  { %106 = vst [vmem:[%s154_s2] sm:$0xff] %v105_v7  }

// kernel: transformer_sta_forward.10
= control target key start
LH: loop header
LB: loop body
LE: loop exit
PB: predicated region body
PF: predicated region fallthrough
CT: control target
= control target key end

     0   :  { %v117_v0 = vmov 0.0   ;;  %vm118_vm0 = vmmov 0   ;;  %vm45_vm1 = vcmask 261120   ;;  %s157_s1 = inlined_call_operand.vmem [shape: bf16[32,128], index: 1, kind: input, shape index: {}]   ;;  %s158_s0 = inlined_call_operand.vmem [shape: bf16[16,32], index: 0, kind: input, shape index: {}]   ;;  %s159_s2 = inlined_call_operand.vmem [shape: f32[1,128], index: 2, kind: input, shape index: {}]   ;;  %s160_s3 = inlined_call_operand.vmem [shape: f32[16,128], index: 3, kind: output, shape index: {}]  }
   0x1   :  { %104 = vmatprep.subr.bf16.mxu0 %v117_v0  ;;  %v114_v1 = vld [vmem:[%s157_s1] sm:$0xff]   ;;  %108 = vmatprep.mubr.msk.bf16.mxu0 %vm118_vm0, %v117_v0  ;;  %v115_v2 = vld [vmem:[%s157_s1 + $0x8] sm:$0xff]  }
   0x2   :  { %105 = vmatpush3.bf16.msra.mxu0 %v114_v1  ;;  %v116_v3 = vld [vmem:[%s158_s0] sm:$0xff]  }
   0x3   :  { %106 = vmatprep.subr.bf16.mxu0 %v117_v0  ;;  %v96_v4 = vld [vmem:[%s159_s2] ss:$0 sm:$0xff] }
   0x6   :  { %107 = vmatpush3.bf16.msra.mxu0 %v115_v2 }
   0x9   :  { %109 = vmatmul.mubr.msk.bf16.vlgmr.msra.gmra.mrb[0].mxu0 %vm45_vm1, %v116_v3 }
  0xdc   :  { %v83_v5 = vpop.f32.mrb[0].mxu0 }
  0xdd   :  { %v84_v6 = vadd.f32 %v96_v4, %v83_v5  ;;  %v110_v7 = vpop.f32.mrb[1].mxu0 }
  0xde   :  { %v86_v8 = vpop.f32.mrb[2].mxu0 }
  0xdf   :  { %90 = vst [vmem:[%s160_s3] sm:$0xff] %v84_v6  ;;  %v87_v9 = vadd.f32 %v96_v4, %v86_v8  ;;  %v111_v10 = vpop.f32.mrb[3].mxu0 }
  0xe1   :  { %91 = vst [vmem:[%s160_s3 + $0x8] sm:$0xff] %v87_v9 }

// kernel: transformer_sta_forward.11
= control target key start
LH: loop header
LB: loop body
LE: loop exit
PB: predicated region body
PF: predicated region fallthrough
CT: control target
= control target key end

     0   :  { %s924_s24 = smov 0   ;;  %s1098_s0 = inlined_call_operand.vmem [shape: f32[128,32], index: 0, kind: input, shape index: {}]   ;;  %s1099_s1 = inlined_call_operand.vmem [shape: f32[1,32], index: 1, kind: input, shape index: {}]   ;;  %s1100_s2 = inlined_call_operand.vmem [shape: f32[1,32], index: 2, kind: input, shape index: {}]   ;;  %s1101_s3 = inlined_call_operand.vmem [shape: bf16[32,128], index: 3, kind: input, shape index: {}]   ;;  %s1102_s4 = inlined_call_operand.vmem [shape: f32[1,128], index: 4, kind: input, shape index: {}]   ;;  %s1103_s5 = inlined_call_operand.vmem [shape: bf16[128,32], index: 5, kind: input, shape index: {}]   ;;  %s1104_s6 = inlined_call_operand.vmem [shape: f32[1,32], index: 6, kind: input, shape index: {}]   ;;  %s1105_s7 = inlined_call_operand.vmem [shape: f32[128,32], index: 7, kind: output, shape index: {}]  }
   0x1 LB: > { %s759_s25 = sadd.s32 4294967295, %s882_s24   ;;  %p763_p0 = scmp.ge.s32.totalorder %s882_s24, 1  ;;  %s882_s24 = sphi %s924_s24, %s17_s24  }
   0x2   : > { %p238_p1 = scmp.lt.s32.totalorder %s882_s24, 3 }
   0x4   : > { %p239_p2 = pnand %p763_p0, %p238_p1 }
   0x5   : > { %s764_s26 = sshll.u32 (!%p239_p2), %s759_s25, 3  ;;  %vm291_vm0 = vcmask (!%p239_p2), 261120   ;;  %v850_v56 = vld [vmem:[%s1101_s3] sm:$0xff] (!%p239_p2)   ;;  %v851_v57 = vld [vmem:[%s1101_s3 + $0x8] sm:$0xff] (!%p239_p2)   ;;  %v854_v60 = vld [vmem:[%s1103_s5 + $0x10] sm:$0xff] (!%p239_p2)  }
   0x6   : > { %242 = sbr.rel (%p239_p2) target bundleno = 790 (0x316), region = 48  ;;  %p271_p3 = scmp.lt.s32.totalorder (!%p239_p2), %s764_s26, 15  ;;  %806 = vmatprep.subr.bf16.mxu0 (!%p239_p2), %v850_v56  ;;  %v852_v58 = vld [vmem:[%s1103_s5] sm:$0xff] (!%p239_p2)   ;;  %v853_v59 = vld [vmem:[%s1103_s5 + $0x8] sm:$0xff] (!%p239_p2)   ;;  %v855_v61 = vld [vmem:[%s1103_s5 + $0x18] sm:$0xff] (!%p239_p2)  }
   0x7   : > { %807 = vmatpush3.bf16.msra.mxu0 (!%p239_p2), %v850_v56  ;;  %818 = vmatprep.subr.bf16.mxu1 (!%p239_p2), %v852_v58  ;;  %v856_v62 = vld [vmem:[%s1103_s5 + $0x20] sm:$0xff] (!%p239_p2)   ;;  %v857_v63 = vld [vmem:[%s1103_s5 + $0x28] sm:$0xff] (!%p239_p2)  }
   0x8   : > { %808 = vmatprep.subr.bf16.mxu0 (!%p239_p2), %v851_v57  ;;  %819 = vmatpush3.bf16.msra.mxu1 (!%p239_p2), %v852_v58 }
   0x9   : > { %820 = vmatprep.subr.bf16.mxu1 (!%p239_p2), %v853_v59 }
   0xb   : > { %809 = vmatpush3.bf16.msra.mxu0 (!%p239_p2), %v851_v57 }
   0xc   : > { %821 = vmatpush3.bf16.msra.mxu1 (!%p239_p2), %v853_v59 }
   0xd   : > { %s1107_s26 = smov (!%p271_p3, %s764_s26), 15  ;;  %822 = vmatprep.subr.bf16.mxu1 %v854_v60 }
   0xe   : > { %s765_s27 = sshll.u32 %s1107_s26, 3 }
   0xf   : > { %s274_s30 = scalar_lea.vmem %s1098_s0, %s765_s27  ;;  %s280_s18 = scalar_lea.vmem %s1105_s7, %s765_s27 }
  0x10   : > { %v940_v0 = vld [vmem:[%s274_s30] sm:$0xff]  ;;  %v942_v1 = vld [vmem:[%s274_s30 + $0x10] sm:$0xff]  ;;  %v944_v2 = vld [vmem:[%s274_s30 + $0x8] sm:$0xff]  ;;  %823 = vmatpush3.bf16.msra.mxu1 %v854_v60 }
  0x11   : > { %v292_v3 = vsel %vm291_vm0, %v940_v0, 0.0  ;;  %v298_v4 = vsel %vm291_vm0, %v942_v1, 0.0  ;;  %v950_v5 = vld [vmem:[%s274_s30 + $0x18] sm:$0xff]  ;;  %v295_v6 = vsel %vm291_vm0, %v944_v2, 0.0  ;;  %v956_v8 = vld [vmem:[%s274_s30 + $0x20] sm:$0xff]  ;;  %v958_v9 = vld [vmem:[%s274_s30 + $0x28] sm:$0xff]  ;;  %824 = vmatprep.subr.bf16.mxu1 %v855_v61 }
  0x12   : > { %293 = vadd.xlane.f32.xlu0 %v292_v3  ;;  %299 = vadd.xlane.f32.xlu1 %v298_v4  ;;  %v301_v7 = vsel %vm291_vm0, %v950_v5, 0.0  ;;  %v304_v10 = vsel %vm291_vm0, %v956_v8, 0.0  ;;  %v307_v11 = vsel %vm291_vm0, %v958_v9, 0.0  ;;  %v964_v12 = vld [vmem:[%s274_s30 + $0x30] sm:$0xff]  ;;  %v966_v13 = vld [vmem:[%s274_s30 + $0x38] sm:$0xff] }
  0x13   : > { %v310_v14 = vsel %vm291_vm0, %v964_v12, 0.0  ;;  %v313_v15 = vsel %vm291_vm0, %v966_v13, 0.0 }
  0x14   : > { %825 = vmatpush3.bf16.msra.mxu1 %v855_v61 }
  0x15   : > { %826 = vmatprep.subr.bf16.mxu1 %v856_v62 }
  0x16   : > { %296 = vadd.xlane.f32.xlu0 %v295_v6  ;;  %302 = vadd.xlane.f32.xlu1 %v301_v7 }
  0x18   : > { %827 = vmatpush3.bf16.msra.mxu1 %v856_v62 }
  0x19   : > { %828 = vmatprep.subr.bf16.mxu1 %v857_v63 }
  0x1a   : > { %305 = vadd.xlane.f32.xlu0 %v304_v10  ;;  %308 = vadd.xlane.f32.xlu1 %v307_v11 }
  0x1c   : > { %829 = vmatpush3.bf16.msra.mxu1 %v857_v63 }
  0x1e   : > { %311 = vadd.xlane.f32.xlu0 %v310_v14  ;;  %314 = vadd.xlane.f32.xlu1 %v313_v15 }
  0x9f   : > { %v294_v16 = vpop.xlane.xlu0 %293  ;;  %v300_v17 = vpop.xlane.xlu1 %299 }
  0xa0   : > { %v317_v18 = vmul.f32 0.03125, %v294_v16  ;;  %v319_v19 = vmul.f32 0.03125, %v300_v17 }
  0xa2   : > { %v973_v20 = vsub.f32 %v940_v0, %v317_v18  ;;  %v976_v21 = vsub.f32 %v942_v1, %v319_v19 }
  0xa3   : > { %v297_v22 = vpop.xlane.xlu0 %296  ;;  %v303_v23 = vpop.xlane.xlu1 %302 }
  0xa4   : > { %v318_v24 = vmul.f32 0.03125, %v297_v22  ;;  %v320_v25 = vmul.f32 0.03125, %v303_v23  ;;  %v333_v26 = vmul.f32 %v973_v20, %v973_v20  ;;  %v335_v27 = vmul.f32 %v976_v21, %v976_v21 }
  0xa6   : > { %v983_v28 = vsub.f32 %v944_v2, %v318_v24  ;;  %v986_v29 = vsub.f32 %v950_v5, %v320_v25  ;;  %v341_v30 = vsel %vm291_vm0, %v333_v26, 0.0  ;;  %v347_v33 = vsel %vm291_vm0, %v335_v27, 0.0 }
  0xa7   : > { %342 = vadd.xlane.f32.xlu0 %v341_v30  ;;  %v306_v31 = vpop.xlane.xlu0 %305  ;;  %v309_v32 = vpop.xlane.xlu1 %308 }
  0xa8   : > { %v321_v34 = vmul.f32 0.03125, %v306_v31  ;;  %v322_v35 = vmul.f32 0.03125, %v309_v32  ;;  %v334_v36 = vmul.f32 %v983_v28, %v983_v28  ;;  %v336_v37 = vmul.f32 %v986_v29, %v986_v29 }
  0xaa   : > { %v995_v38 = vsub.f32 %v956_v8, %v321_v34  ;;  %v998_v39 = vsub.f32 %v958_v9, %v322_v35  ;;  %v344_v40 = vsel %vm291_vm0, %v334_v36, 0.0  ;;  %v350_v43 = vsel %vm291_vm0, %v336_v37, 0.0  ;;  %v768_v37 = vld [vmem:[%s1099_s1] ss:$0 sm:$0xff] }
  0xab   : > { %348 = vadd.xlane.f32.xlu0 %v347_v33  ;;  %345 = vadd.xlane.f32.xlu1 %v344_v40  ;;  %v312_v41 = vpop.xlane.xlu0 %311  ;;  %v315_v42 = vpop.xlane.xlu1 %314 }
  0xac   : > { %v323_v44 = vmul.f32 0.03125, %v312_v41  ;;  %v324_v45 = vmul.f32 0.03125, %v315_v42  ;;  %v337_v46 = vmul.f32 %v995_v38, %v995_v38  ;;  %v338_v47 = vmul.f32 %v998_v39, %v998_v39 }
  0xae   : > { %v1007_v48 = vsub.f32 %v964_v12, %v323_v44  ;;  %v1010_v49 = vsub.f32 %v966_v13, %v324_v45  ;;  %v353_v50 = vsel %vm291_vm0, %v337_v46, 0.0  ;;  %v356_v51 = vsel %vm291_vm0, %v338_v47, 0.0 }
  0xaf   : > { %351 = vadd.xlane.f32.xlu1 %v350_v43  ;;  %354 = vadd.xlane.f32.xlu0 %v353_v50 }
  0xb0   : > { %v339_v52 = vmul.f32 %v1007_v48, %v1007_v48  ;;  %v340_v53 = vmul.f32 %v1010_v49, %v1010_v49 }
  0xb2   : > { %v359_v54 = vsel %vm291_vm0, %v339_v52, 0.0  ;;  %v362_v55 = vsel %vm291_vm0, %v340_v53, 0.0 }
  0xb3   : > { %357 = vadd.xlane.f32.xlu1 %v356_v51  ;;  %360 = vadd.xlane.f32.xlu0 %v359_v54 }
  0xb7   : > { %363 = vadd.xlane.f32.xlu1 %v362_v55 }
 0x134   : > { %v343_v3 = vpop.xlane.xlu0 %342 }
 0x135   : > { %v365_v4 = vmul.f32 0.03125, %v343_v3 }
 0x137   : > { %v373_v6 = vadd.f32 1e-05, %v365_v4 }
 0x138   : > { %v346_v7 = vpop.xlane.xlu1 %345  ;;  %v349_v10 = vpop.xlane.xlu0 %348 }
 0x139   : > { %860 = vrsqrt.f32 %v373_v6  ;;  %v366_v11 = vmul.f32 0.03125, %v346_v7  ;;  %v367_v14 = vmul.f32 0.03125, %v349_v10 }
 0x13b   : > { %v374_v15 = vadd.f32 1e-05, %v366_v11  ;;  %v375_v16 = vadd.f32 1e-05, %v367_v14 }
 0x13c   : > { %v352_v17 = vpop.xlane.xlu1 %351  ;;  %v355_v18 = vpop.xlane.xlu0 %354 }
 0x13d   : > { %862 = vrsqrt.f32 %v374_v15  ;;  %v368_v19 = vmul.f32 0.03125, %v352_v17  ;;  %v369_v22 = vmul.f32 0.03125, %v355_v18 }
 0x13e   : > { %864 = vrsqrt.f32 %v375_v16  ;;  %v770_v16 = vld [vmem:[%s1102_s4] ss:$0 sm:$0xff] }
 0x13f   : > { %v376_v23 = vadd.f32 1e-05, %v368_v19  ;;  %v377_v24 = vadd.f32 1e-05, %v369_v22 }
 0x140   : > { %v358_v25 = vpop.xlane.xlu1 %357  ;;  %v361_v26 = vpop.xlane.xlu0 %360 }
 0x141   : > { %866 = vrsqrt.f32 %v376_v23  ;;  %v370_v27 = vmul.f32 0.03125, %v358_v25  ;;  %v371_v30 = vmul.f32 0.03125, %v361_v26 }
 0x142   : > { %868 = vrsqrt.f32 %v377_v24 }
 0x143   : > { %v861_v31 = vpop.eup %860  ;;  %v378_v32 = vadd.f32 1e-05, %v370_v27  ;;  %v379_v33 = vadd.f32 1e-05, %v371_v30 }
 0x144   : > { %v364_v34 = vpop.xlane.xlu1 %363  ;;  %v389_v35 = vmul.f32 %v861_v31, %v973_v20  ;;  %v769_v20 = vld [vmem:[%s1100_s2] ss:$0 sm:$0xff] }
 0x145   : > { %870 = vrsqrt.f32 %v378_v32  ;;  %v372_v36 = vmul.f32 0.03125, %v364_v34 }
 0x146   : > { %872 = vrsqrt.f32 %v379_v33  ;;  %v404_v44 = vmul.f32 %v768_v37, %v389_v35 }
 0x147   : > { %v863_v40 = vpop.eup %862  ;;  %v380_v41 = vadd.f32 1e-05, %v372_v36 }
 0x148   : > { %v865_v42 = vpop.eup %864  ;;  %v390_v43 = vmul.f32 %v863_v40, %v983_v28  ;;  %v419_v52 = vadd.f32 %v769_v20, %v404_v44 }
 0x149   : > { %v391_v45 = vmul.f32 %v865_v42, %v976_v21  ;;  %874 = vrsqrt.f32 %v380_v41 }
 0x14a   : > { %v405_v46 = vmul.f32 %v768_v37, %v390_v43 }
 0x14b   : > { %v867_v47 = vpop.eup %866  ;;  %v406_v54 = vmul.f32 %v768_v37, %v391_v45 }
 0x14c   : > { %v869_v50 = vpop.eup %868  ;;  %v392_v51 = vmul.f32 %v867_v47, %v986_v29  ;;  %v420_v53 = vadd.f32 %v769_v20, %v405_v46 }
 0x14d   : > { %v393_v55 = vmul.f32 %v869_v50, %v995_v38  ;;  %v421_v59 = vadd.f32 %v769_v20, %v406_v54 }
 0x14e   : > { %v427_v56 = vpack.c.bf16 %v420_v53, %v419_v52  ;;  %v407_v28 = vmul.f32 %v768_v37, %v392_v51  ;;  %v785_v53 = vld [vmem:[%s1104_s6] ss:$0 sm:$0xff] }
 0x14f   : > { %v871_v57 = vpop.eup %870  ;;  %v408_v61 = vmul.f32 %v768_v37, %v393_v55 }
 0x150   : > { %v873_v58 = vpop.eup %872  ;;  %v394_v21 = vmul.f32 %v871_v57, %v998_v39  ;;  %810 = vmatprep.mubr.msk.bf16.mxu0 %vm291_vm0, %v427_v56  ;;  %v422_v60 = vadd.f32 %v769_v20, %v407_v28 }
 0x151   : > { %v395_v62 = vmul.f32 %v873_v58, %v1007_v48  ;;  %v423_v38 = vadd.f32 %v769_v20, %v408_v61  ;;  %v858_v48 = vld [vmem:[%s1103_s5 + $0x30] sm:$0xff]  }
 0x152   : > { %v428_v63 = vpack.c.bf16 %v422_v60, %v421_v59  ;;  %v409_v29 = vmul.f32 %v768_v37, %v394_v21  ;;  %830 = vmatprep.subr.bf16.mxu1 %v858_v48 }
 0x153   : > { %v875_v3 = vpop.eup %874  ;;  %v410_v7 = vmul.f32 %v768_v37, %v395_v62  ;;  %831 = vmatpush3.bf16.msra.mxu1 %v858_v48 }
 0x154   : > { %v396_v4 = vmul.f32 %v875_v3, %v1010_v49  ;;  %811 = vmatmul.mubr.msk.bf16.vlgmr.msra.gmra.mrb[0].mxu0 %vm291_vm0, %v428_v63  ;;  %v424_v6 = vadd.f32 %v769_v20, %v409_v29  ;;  %v859_v49 = vld [vmem:[%s1103_s5 + $0x38] sm:$0xff]  }
 0x155   : > { %v425_v39 = vadd.f32 %v769_v20, %v410_v7  ;;  %832 = vmatprep.subr.bf16.mxu1 %v859_v49 }
 0x156   : > { %v429_v10 = vpack.c.bf16 %v424_v6, %v423_v38  ;;  %v411_v11 = vmul.f32 %v768_v37, %v396_v4 }
 0x157   : > { %833 = vmatpush3.bf16.msra.mxu1 %v859_v49 }
 0x158   : > { %814 = vmatprep.mubr.msk.bf16.mxu0 %vm291_vm0, %v429_v10  ;;  %v426_v14 = vadd.f32 %v769_v20, %v411_v11 }
 0x15a   : > { %v430_v15 = vpack.c.bf16 %v426_v14, %v425_v39 }
 0x15c   : > { %815 = vmatmul.mubr.msk.bf16.gmra.mrb[4].mxu0 %vm291_vm0, %v430_v15 }
 0x227   : > { %v812_v17 = vpop.f32.mrb[0].mxu0 }
 0x228   : > { %v509_v18 = vadd.f32 %v812_v17, %v770_v16  ;;  %v500_v19 = vpop.f32.mrb[1].mxu0 }
 0x229   : > { %v501_v22 = vadd.f32 %v770_v16, %v500_v19  ;;  %v813_v23 = vpop.f32.mrb[2].mxu0 }
 0x22a   : > { %v512_v24 = vadd.f32 %v813_v23, %v770_v16  ;;  %v503_v25 = vpop.f32.mrb[3].mxu0  ;;  %v533_v27 = vmax.f32 %v509_v18, 0.0 }
 0x22b   : > { %v504_v26 = vadd.f32 %v770_v16, %v503_v25  ;;  %v531_v31 = vmax.f32 %v501_v22, 0.0 }
 0x22c   : > { %v534_v30 = vmax.f32 %v512_v24, 0.0 }
 0x22d   : > { %v532_v32 = vmax.f32 %v504_v26, 0.0 }
 0x22e   : > { %v540_v33 = vpack.c.bf16 %v534_v30, %v533_v27 }
 0x22f   : > { %v816_v34 = vpop.f32.mrb[4].mxu0  ;;  %v539_v35 = vpack.c.bf16 %v532_v32, %v531_v31 }
 0x230   : > { %v525_v36 = vadd.f32 %v816_v34, %v770_v16  ;;  %v516_v37 = vpop.f32.mrb[5].mxu0 }
 0x231   : > { %v517_v40 = vadd.f32 %v770_v16, %v516_v37  ;;  %v817_v41 = vpop.f32.mrb[6].mxu0  ;;  %834 = vmatprep.mubr.bf16.mxu1 %v539_v35 }
 0x232   : > { %v528_v42 = vadd.f32 %v817_v41, %v770_v16  ;;  %v519_v43 = vpop.f32.mrb[7].mxu0  ;;  %835 = vmatmul.mubr.bf16.vlgmr.msra.gmra.mrb[0].mxu1 %v540_v33  ;;  %v537_v45 = vmax.f32 %v525_v36, 0.0 }
 0x233   : > { %v520_v44 = vadd.f32 %v770_v16, %v519_v43  ;;  %v535_v46 = vmax.f32 %v517_v40, 0.0 }
 0x234   : > { %v538_v20 = vmax.f32 %v528_v42, 0.0 }
 0x235   : > { %v536_v47 = vmax.f32 %v520_v44, 0.0 }
 0x236   : > { %v542_v50 = vpack.c.bf16 %v538_v20, %v537_v45 }
 0x237   : > { %v541_v51 = vpack.c.bf16 %v536_v47, %v535_v46 }
 0x239   : > { %838 = vmatprep.mubr.bf16.mxu1 %v541_v51 }
 0x23a   : > { %839 = vmatmul.mubr.bf16.gmra.mrb[4].mxu1 %v542_v50 }
 0x305   : > { %v836_v52 = vpop.f32.mrb[0].mxu1 }
 0x306   : > { %v674_v54 = vadd.f32 %v836_v52, %v942_v1  ;;  %v641_v55 = vpop.f32.mrb[1].mxu1 }
 0x307   : > { %v672_v56 = vadd.f32 %v641_v55, %v940_v0  ;;  %v837_v28 = vpop.f32.mrb[2].mxu1 }
 0x308   : > { %v689_v57 = vadd.f32 %v785_v53, %v674_v54  ;;  %v675_v58 = vadd.f32 %v837_v28, %v950_v5  ;;  %v644_v21 = vpop.f32.mrb[3].mxu1 }
 0x309   : > { %v687_v59 = vadd.f32 %v785_v53, %v672_v56  ;;  %v673_v60 = vadd.f32 %v644_v21, %v944_v2 }
 0x30a   : > { %697 = vst.msk [vmem:[%s280_s18 + $0x10] sm:$0xff] %vm291_vm0, %v689_v57  ;;  %v690_v61 = vadd.f32 %v785_v53, %v675_v58 }
 0x30b   : > { %695 = vst.msk [vmem:[%s280_s18] sm:$0xff] %vm291_vm0, %v687_v59  ;;  %v688_v1 = vadd.f32 %v785_v53, %v673_v60 }
 0x30c   : > { %698 = vst.msk [vmem:[%s280_s18 + $0x18] sm:$0xff] %vm291_vm0, %v690_v61 }
 0x30d   : > { %696 = vst.msk [vmem:[%s280_s18 + $0x8] sm:$0xff] %vm291_vm0, %v688_v1  ;;  %v840_v62 = vpop.f32.mrb[4].mxu1 }
 0x30e   : > { %v678_v0 = vadd.f32 %v840_v62, %v964_v12  ;;  %v657_v63 = vpop.f32.mrb[5].mxu1 }
 0x30f   : > { %v676_v5 = vadd.f32 %v657_v63, %v956_v8  ;;  %v841_v29 = vpop.f32.mrb[6].mxu1 }
 0x310   : > { %v693_v3 = vadd.f32 %v785_v53, %v678_v0  ;;  %v679_v2 = vadd.f32 %v841_v29, %v966_v13  ;;  %v660_v4 = vpop.f32.mrb[7].mxu1 }
 0x311   : > { %v691_v38 = vadd.f32 %v785_v53, %v676_v5  ;;  %v677_v6 = vadd.f32 %v660_v4, %v958_v9 }
 0x312   : > { %701 = vst.msk [vmem:[%s280_s18 + $0x30] sm:$0xff] %vm291_vm0, %v693_v3  ;;  %v694_v7 = vadd.f32 %v785_v53, %v679_v2 }
 0x313   : > { %699 = vst.msk [vmem:[%s280_s18 + $0x20] sm:$0xff] %vm291_vm0, %v691_v38  ;;  %v692_v10 = vadd.f32 %v785_v53, %v677_v6 }
 0x314   : > { %702 = vst.msk [vmem:[%s280_s18 + $0x38] sm:$0xff] %vm291_vm0, %v694_v7 }
 0x315   : > { %700 = vst.msk [vmem:[%s280_s18 + $0x28] sm:$0xff] %vm291_vm0, %v692_v10 }
 0x316 PF: > { %s17_s24 = sadd.s32 1, %s882_s24  }
 0x317   : > { %p14_p4 = scmp.ge.s32.totalorder %s17_s24, 4  }
 0x319   :  { %16 = sbr.rel (!%p14_p4) target bundleno = 1 (0x1), region = 78 }

</bundles_post_ra>
